<compile_context>
chip_gen: v7x
topology: tpu7x:2x2x1
jax: 0.10.0
libtpu: 0.0.40
codegen_flags: <defaults>
</compile_context>

<pallas_src>
import functools

import jax
import jax.numpy as jnp
from jax.experimental import pallas as pl
from jax.experimental.pallas import tpu as pltpu

_LANE = 128
_TM = 256          # adj row tile (output rows per grid step)
_TK = 512          # adj column tile (reduction step); _TM divides _TK
_NEG_BIG = -1e30   # finite "-inf" for masking padded class lanes


def _round_up(x, m):
    return (x + m - 1) // m * m


def _compiler_params(semantics, need_bytes):
    # Explicit scoped-VMEM limit: v5e defaults to only 16 MiB scoped VMEM;
    # cap well below v7x's 64 MiB physical VMEM.
    limit = int(min(max(2 * need_bytes, 16 * 1024 * 1024), 56 * 1024 * 1024))
    return pltpu.CompilerParams(dimension_semantics=semantics,
                                vmem_limit_bytes=limit)


# ---------------------------------------------------------------------------
# Kernels
# ---------------------------------------------------------------------------
def _transform_kernel(x_ref, w_ref, o_ref):
    """support = x_tile @ W  (bf16 operands, f32 accumulate, bf16 store)."""
    o_ref[...] = jnp.dot(x_ref[...], w_ref[...],
                         preferred_element_type=jnp.float32).astype(o_ref.dtype)


def _agg_relu_project_kernel(adj_ref, sup_ref, b1_ref, w2_ref, o_ref, acc_ref,
                             *, tk):
    """support2_tile = relu(adj_tile-row @ support1 + b1) @ W2 (k = reduction)."""
    k = pl.program_id(1)

    @pl.when(k == 0)
    def _():
        acc_ref[...] = jnp.zeros_like(acc_ref)

    off = pl.multiple_of(k * tk, tk)
    acc_ref[...] += jnp.dot(adj_ref[...], sup_ref[pl.ds(off, tk), :],
                            preferred_element_type=jnp.float32)

    @pl.when(k == pl.num_programs(1) - 1)
    def _():
        h = jnp.maximum(acc_ref[...] + b1_ref[...], 0.0)
        # F.dropout(..., training=False) -> identity at inference time.
        o_ref[...] = jnp.dot(h.astype(jnp.bfloat16), w2_ref[...],
                             preferred_element_type=jnp.float32).astype(o_ref.dtype)


def _agg_logsoftmax_kernel(adj_ref, sup_ref, b2_ref, o_ref, acc_ref,
                           *, tk, nclass):
    """out_tile = log_softmax(adj_tile-row @ support2 + b2) with lane masking."""
    k = pl.program_id(1)

    @pl.when(k == 0)
    def _():
        acc_ref[...] = jnp.zeros_like(acc_ref)

    off = pl.multiple_of(k * tk, tk)
    acc_ref[...] += jnp.dot(adj_ref[...], sup_ref[pl.ds(off, tk), :],
                            preferred_element_type=jnp.float32)

    @pl.when(k == pl.num_programs(1) - 1)
    def _():
        logits = acc_ref[...] + b2_ref[...]
        # mask padded class lanes so exp(0)=1 cannot corrupt the normalizer
        lane = jax.lax.broadcasted_iota(jnp.int32, logits.shape, 1)
        logits = jnp.where(lane < nclass, logits, _NEG_BIG)
        m = jnp.max(logits, axis=1, keepdims=True)
        shifted = logits - m
        lse = jnp.log(jnp.sum(jnp.exp(shifted), axis=1, keepdims=True))
        o_ref[...] = (shifted - lse).astype(o_ref.dtype)


# ---------------------------------------------------------------------------
# Wrappers
# ---------------------------------------------------------------------------
def prepare_gcn_params(params):
    """One-time parameter prep: pad hidden/class widths to 128 lanes, cast bf16."""
    (w1, b1), (w2, b2) = params
    nfeat, nhid = w1.shape
    nclass = w2.shape[1]
    hid_p = _round_up(nhid, _LANE)
    f2_p = _round_up(nclass, _LANE)

    w1p = jnp.zeros((nfeat, hid_p), jnp.bfloat16).at[:, :nhid].set(
        w1.astype(jnp.bfloat16))
    b1p = jnp.zeros((1, hid_p), jnp.float32).at[:, :nhid].set(
        jnp.reshape(b1, (1, nhid)).astype(jnp.float32))
    w2p = jnp.zeros((hid_p, f2_p), jnp.bfloat16).at[:nhid, :nclass].set(
        w2.astype(jnp.bfloat16))
    b2p = jnp.zeros((1, f2_p), jnp.float32).at[:, :nclass].set(
        jnp.reshape(b2, (1, nclass)).astype(jnp.float32))
    return dict(w1p=w1p, b1p=b1p, w2p=w2p, b2p=b2p,
                nfeat=nfeat, nhid=nhid, nclass=nclass, hid_p=hid_p, f2_p=f2_p)


def gcn_forward(prepped, x, adj, adj_2=None):
    """GCN forward: log_softmax(adj @ relu(adj @ x@W1 + b1) @ W2 + b2, dim=1)."""
    # TODO(synk): second_order=True (adj_2) path not supported.
    assert adj_2 is None, "second_order / adj_2 path not implemented"
    N, nfeat = x.shape
    hid_p, f2_p, nclass = prepped["hid_p"], prepped["f2_p"], prepped["nclass"]

    tm, tk = _TM, _TK
    n_p = _round_up(N, tk)                      # tm | tk | n_p

    # zero-pad nodes: padded adj rows/cols and x rows are zero => exactly neutral
    x_p = jnp.zeros((n_p, nfeat), jnp.bfloat16).at[:N, :].set(
        x.astype(jnp.bfloat16))
    adj_p = jnp.zeros((n_p, n_p), jnp.bfloat16).at[:N, :N].set(
        adj.astype(jnp.bfloat16))

    # ---- 1. support1 = x @ W1 --------------------------------------------
    support1 = pl.pallas_call(
        _transform_kernel,
        out_shape=jax.ShapeDtypeStruct((n_p, hid_p), jnp.bfloat16),
        grid_spec=pltpu.PrefetchScalarGridSpec(
            num_scalar_prefetch=0,
            grid=(n_p // tm,),
            in_specs=[pl.BlockSpec((tm, nfeat), lambda i: (i, 0)),
                      pl.BlockSpec((nfeat, hid_p), lambda i: (0, 0))],
            out_specs=pl.BlockSpec((tm, hid_p), lambda i: (i, 0))),
        compiler_params=_compiler_params(
            ("parallel",),
            (2 * tm * nfeat + nfeat * hid_p + 2 * tm * hid_p) * 2),
        cost_estimate=pl.CostEstimate(
            flops=2 * n_p * nfeat * hid_p, transcendentals=0,
            bytes_accessed=2 * (n_p * nfeat + nfeat * hid_p + n_p * hid_p)),
    )(x_p, prepped["w1p"])

    grid2 = (n_p // tm, n_p // tk)

    # ---- 2. support2 = relu(adj @ support1 + b1) @ W2 ----------------------
    support2 = pl.pallas_call(
        functools.partial(_agg_relu_project_kernel, tk=tk),
        out_shape=jax.ShapeDtypeStruct((n_p, f2_p), jnp.bfloat16),
        grid_spec=pltpu.PrefetchScalarGridSpec(
            num_scalar_prefetch=0,
            grid=grid2,
            in_specs=[pl.BlockSpec((tm, tk), lambda i, k: (i, k)),      # adj, streamed
                      pl.BlockSpec((n_p, hid_p), lambda i, k: (0, 0)),  # support1, resident
                      pl.BlockSpec((1, hid_p), lambda i, k: (0, 0)),    # b1
                      pl.BlockSpec((hid_p, f2_p), lambda i, k: (0, 0))],# W2
            out_specs=pl.BlockSpec((tm, f2_p), lambda i, k: (i, 0)),
            scratch_shapes=[pltpu.VMEM((tm, hid_p), jnp.float32)]),
        compiler_params=_compiler_params(
            ("parallel", "arbitrary"),
            (2 * tm * tk + 2 * n_p * hid_p + hid_p * f2_p + 2 * tm * f2_p) * 2
            + tm * hid_p * 4),
        cost_estimate=pl.CostEstimate(
            flops=2 * n_p * n_p * hid_p + 2 * n_p * hid_p * f2_p,
            transcendentals=0,
            bytes_accessed=2 * (n_p * n_p + n_p * hid_p + hid_p * f2_p + n_p * f2_p)),
    )(adj_p, support1, prepped["b1p"], prepped["w2p"])

    # ---- 3. out = log_softmax(adj @ support2 + b2) --------------------------
    out_p = pl.pallas_call(
        functools.partial(_agg_logsoftmax_kernel, tk=tk, nclass=nclass),
        out_shape=jax.ShapeDtypeStruct((n_p, f2_p), jnp.float32),
        grid_spec=pltpu.PrefetchScalarGridSpec(
            num_scalar_prefetch=0,
            grid=grid2,
            in_specs=[pl.BlockSpec((tm, tk), lambda i, k: (i, k)),      # adj, streamed
                      pl.BlockSpec((n_p, f2_p), lambda i, k: (0, 0)),   # support2, resident
                      pl.BlockSpec((1, f2_p), lambda i, k: (0, 0))],    # b2
            out_specs=pl.BlockSpec((tm, f2_p), lambda i, k: (i, 0)),
            scratch_shapes=[pltpu.VMEM((tm, f2_p), jnp.float32)]),
        compiler_params=_compiler_params(
            ("parallel", "arbitrary"),
            (2 * tm * tk + 2 * n_p * f2_p) * 2 + 2 * tm * f2_p * 4 + tm * f2_p * 4),
        cost_estimate=pl.CostEstimate(
            flops=2 * n_p * n_p * f2_p,
            transcendentals=n_p * f2_p,
            bytes_accessed=2 * (n_p * n_p + n_p * f2_p) + 4 * n_p * f2_p),
    )(adj_p, support2, prepped["b2p"])

    return out_p[:N, :nclass]


def init_gc_params(key, in_features, out_features):
    """Mirrors pygcn GraphConvolution.reset_parameters: uniform(-stdv, stdv),
    stdv = 1/sqrt(out_features)."""
    stdv = 1.0 / jnp.sqrt(jnp.float32(out_features))
    kw, kb = jax.random.split(key)
    w = jax.random.uniform(kw, (in_features, out_features),
                           jnp.float32, minval=-stdv, maxval=stdv)
    b = jax.random.uniform(kb, (1, out_features),
                           jnp.float32, minval=-stdv, maxval=stdv)
    return w, b


def _reference_forward(params, x, adj):
    (w1, b1), (w2, b2) = params
    h = jnp.maximum(adj @ (x @ w1) + b1, 0.0)
    logits = adj @ (h @ w2) + b2
    return jax.nn.log_softmax(logits, axis=1)


if __name__ == "__main__":
    N, nfeat, nhid, nclass = 64, 32, 32, 16

    key = jax.random.PRNGKey(0)
    kx, kadj, k1, k2 = jax.random.split(key, 4)

    # node features
    x = jax.random.normal(kx, (N, nfeat), jnp.float32)

    # symmetric, row-normalized dense adjacency with self-loops
    a = (jax.random.uniform(kadj, (N, N)) < 0.1).astype(jnp.float32)
    a = jnp.maximum(a, a.T) + jnp.eye(N, dtype=jnp.float32)
    adj = a / jnp.sum(a, axis=1, keepdims=True)

    params = (init_gc_params(k1, nfeat, nhid),
              init_gc_params(k2, nhid, nclass))
    prepped = prepare_gcn_params(params)   # one-time pad/cast (hoisted out of forward)

    out = gcn_forward(prepped, x, adj)
    out = jax.block_until_ready(out)

    # sanity: shape, finiteness, rows sum (in prob space) to ~1
    assert out.shape == (N, nclass)
    row_sums = jnp.sum(jnp.exp(out), axis=1)
    assert bool(jnp.all(jnp.abs(row_sums - 1.0) < 1e-3))
    assert bool(jnp.all(jnp.isfinite(out)))

    # bf16 MXU operands with f32 accumulation: small abs error vs f32 reference
    ref = _reference_forward(params, x, adj)
    assert bool(jnp.max(jnp.abs(out - ref)) < 5e-2)

    print("KERNEL_OK")
</pallas_src>

<mosaic_0001>
module attributes {stable_mosaic.version = 11 : i64} {
  func.func @_transform_kernel(%arg0: i32, %arg1: memref<256x32xbf16, #tpu.memory_space<vmem>>, %arg2: memref<32x128xbf16, #tpu.memory_space<vmem>>, %arg3: memref<256x128xbf16, #tpu.memory_space<vmem>>) attributes {dimension_semantics = [#tpu.dimension_semantics<parallel>], iteration_bounds = array<i64: 2>, scalar_prefetch = 0 : i64, scratch_operands = 0 : i64, tpu.core_type = #tpu.core_type<tc>, window_params = [{transform_indices = @transform_0, window_bounds = array<i64: 256, 32>}, {pipeline_mode = #tpu.pipeline_mode<synchronous>, transform_indices = @transform_1, window_bounds = array<i64: 32, 128>}, {transform_indices = @transform_2, window_bounds = array<i64: 256, 128>}]} {
    %c0 = arith.constant 0 : index
    %c0_0 = arith.constant 0 : index
    %0 = vector.load %arg1[%c0, %c0_0] : memref<256x32xbf16, #tpu.memory_space<vmem>>, vector<256x32xbf16>
    %c0_1 = arith.constant 0 : index
    %c0_2 = arith.constant 0 : index
    %1 = vector.load %arg2[%c0_1, %c0_2] : memref<32x128xbf16, #tpu.memory_space<vmem>>, vector<32x128xbf16>
    %cst = arith.constant dense<0.000000e+00> : vector<256x128xf32>
    %2 = tpu.matmul %0, %1, %cst {dimension_numbers = #tpu.dot_dimension_numbers<[1], [0], [0], [1], [0, 0, 1, 1], [], []>} : vector<256x32xbf16>, vector<32x128xbf16>, vector<256x128xf32> -> vector<256x128xf32>
    %3 = arith.truncf %2 : vector<256x128xf32> to vector<256x128xbf16>
    %c0_3 = arith.constant 0 : index
    %c0_4 = arith.constant 0 : index
    %4 = vector.load %arg3[%c0_3, %c0_4] : memref<256x128xbf16, #tpu.memory_space<vmem>>, vector<256x128xbf16>
    tpu.vector_store %arg3[%c0_3, %c0_4], %3 {strides = array<i32>} : memref<256x128xbf16, #tpu.memory_space<vmem>>, vector<256x128xbf16>,
    return
  }
  func.func @transform_0(%arg0: i32) -> (i32, i32) {
    %c0_i32 = arith.constant 0 : i32
    %c0_i32_0 = arith.constant 0 : i32
    return %arg0, %c0_i32 : i32, i32
  }
  func.func @transform_1(%arg0: i32) -> (i32, i32) {
    %c0_i32 = arith.constant 0 : i32
    %c0_i32_0 = arith.constant 0 : i32
    %c0_i32_1 = arith.constant 0 : i32
    return %c0_i32, %c0_i32_0 : i32, i32
  }
  func.func @transform_2(%arg0: i32) -> (i32, i32) {
    %c0_i32 = arith.constant 0 : i32
    %c0_i32_0 = arith.constant 0 : i32
    return %arg0, %c0_i32 : i32, i32
  }
}

</mosaic_0001>

<bundles_post_ra>
// kernel: tpu_custom_call.1
= control target key start
LH: loop header
LB: loop body
LE: loop exit
PB: predicated region body
PF: predicated region fallthrough
CT: control target
= control target key end

     0   :  { %7 = vsyncpa [#allocation3], 0  ;;  %s1290_s0 = inlined_call_operand.vmem [shape: bf16[512,32], index: 0, kind: input, shape index: {}]   ;;  %s1291_s1 = inlined_call_operand.vmem [shape: bf16[32,128], index: 1, kind: input, shape index: {}]   ;;  %s1292_s2 = inlined_call_operand.hbm [shape: bf16[512,128], index: 2, kind: output, shape index: {}]  }
   0x1   :  { %9 = vsyncpa [#allocation3 + $0x1], 0  ;;  %s1125_s9 = smov 0   ;;  %s1127_s10 = smov 0  }
   0x2   :  { %s1129_s11 = smov 0   ;;  %s1131_s12 = smov 0  }
   0x3 LB: > { %s1146_s13 = sadd.s32 4294967295, %s1105_s12   ;;  %s720_s14 = sadd.s32 4294967294, %s1105_s12   ;;  %s1105_s12 = sphi %s1131_s12, %s1298_s12   ;;  %s1101_s11 = sphi %s1129_s11, %s1297_s11   ;;  %s1097_s10 = sphi %s1127_s10, %s1296_s10   ;;  %s1093_s9 = sphi %s1125_s9, %s1295_s9  }
   0x4   : > { %s1150_s15 = sadd.s32 1, %s1105_s12   ;;  %s69_s16 = sadd.s32 1, %s1101_s11 }
   0x5   : > { %s66_s17 = ssub.s32 %s1105_s12, %s1150_s15  ;;  %p79_p0 = scmp.ne.s32.totalorder %s1101_s11, %s1097_s10 }
   0x6   : > { %p67_p1 = scmp.eq.s32.totalorder %s66_s17, 0  ;;  %p80_p2 = scmp.eq.s32.totalorder %s1146_s13, 1 }
   0x7   : > { %p85_p3 = scmp.ne.s32.totalorder %s1097_s10, %s1093_s9  ;;  %p86_p4 = scmp.eq.s32.totalorder %s720_s14, 1 }
   0x8   : > { %s1161_s18 = scalar_select %p67_p1, %s1101_s11, %s69_s16  }
   0x9   : > { %p1163_p5 = por %p80_p2, %p79_p0  ;;  %p1167_p6 = por %p86_p4, %p85_p3 }
   0xa   : > { %p723_p7 = scmp.ge.s32.totalorder %s1105_s12, 1  ;;  %p116_p8 = scmp.lt.s32.totalorder %s1105_s12, 3 }
   0xc   : > { %p117_p9 = pnand %p723_p7, %p116_p8 }
   0xd   : > { %v1025_v0 = vld [vmem:[%s1291_s1] sm:$0xff] (!%p117_p9)   ;;  %s725_s23 = sshll.u32 (!%p117_p9), %s1146_s13, 5  ;;  %v1026_v1 = vld [vmem:[%s1291_s1 + $0x8] sm:$0xff] (!%p117_p9)   ;;  %vm274_vm0 = vcmask (!%p117_p9), 261120   ;;  %s135_s30 = sand.u32 (!%p117_p9), 1, %s1097_s10  }
   0xe   : > { %120 = sbr.rel (%p117_p9) target bundleno = 283 (0x11b), region = 28  ;;  %p139_p10 = scmp.lt.s32.totalorder (!%p117_p9), %s725_s23, 63  ;;  %944 = vmatprep.subr.bf16.mxu0 (!%p117_p9), %v1025_v0  ;;  %980 = vmatprep.subr.bf16.mxu1 (!%p117_p9), %v1025_v0 }
   0xf   : > { %945 = vmatpush3.bf16.msra.mxu0 (!%p117_p9), %v1025_v0  ;;  %982 = vmatpush3.bf16.msra.mxu1 (!%p117_p9), %v1025_v0  ;;  %s724_s3 = sshll.u32 (!%p117_p9), %s135_s30, 7  ;;  %s830_s5 = sshll.u32 (!%p117_p9), %s1146_s13, 11 }
  0x10   : > { %946 = vmatprep.subr.bf16.mxu0 (!%p117_p9), %v1026_v1  ;;  %981 = vmatprep.subr.bf16.mxu1 (!%p117_p9), %v1026_v1  ;;  %s1220_s4 = scalar_lea.vmem (!%p117_p9), [#allocation2], %s724_s3  ;;  %s1239_s14 = scalar_lea.hbm (!%p117_p9), %s1292_s2, %s830_s5 }
  0x11   : > { %s658_s6 = sshll.u32 (!%p117_p9), %s1220_s4, 4  ;;  %s1249_s13 = scalar_lea.sflag (!%p117_p9), [#allocation3], %s135_s30  ;;  %s1241_s6 = int_to_ptr.vmem [resolvable:$true] %s658_s6 }
  0x12   : > { %s1043_s16 = scalar_lea.vmem (!%p117_p9), %s1241_s6, 2048  ;;  %s1107_s17 = smov (!%p117_p9), [#allocation2]  }
  0x13   : > { %947 = vmatpush3.bf16.msra.mxu0 (!%p117_p9), %v1026_v1  ;;  %983 = vmatpush3.bf16.msra.mxu1 (!%p117_p9), %v1026_v1  ;;  %p1044_p11 = scmp.ne.s32.totalorder (!%p117_p9), %s1241_s6, %s1043_s16  ;;  %s1047_s21 = sshll.u32 (!%p117_p9), %s1107_s17, 4  ;;  %s1048_s21 = int_to_ptr.vmem [resolvable:$false] %s1047_s21 }
  0x14   : > { %s1049_s22 = scalar_lea.vmem (!%p117_p9), %s1048_s21, 4096  ;;  %p1050_p0 = scmp.lt.s32.totalorder (!%p117_p9), %s1241_s6, %s1048_s21 }
  0x15   : > { %s1300_s23 = smov (!%p139_p10, %s725_s23), 63  ;;  %p1045_p12 = pnand %p1044_p11, %p1163_p5 }
  0x16   : > { %s726_s26 = sshll.u32 %s1300_s23, 2  ;;  %p1051_p1 = scmp.lt.s32.totalorder %s1049_s22, %s1043_s16 }
  0x17   : > { %s1183_s29 = scalar_lea.vmem %s1290_s0, %s726_s26  ;;  %p1046_p13 = pneg %p1045_p12 }
  0x18   : > { %v1027_v2 = vld [vmem:[%s1183_s29] sm:$0xff]   ;;  %v1029_v4 = vld [vmem:[%s1183_s29 + $0x8] sm:$0xff]   ;;  %v1031_v6 = vld [vmem:[%s1183_s29 + $0x10] sm:$0xff]   ;;  %p1052_p2 = por %p1051_p1, %p1050_p0 }
  0x19   : > { %v1028_v3 = vld [vmem:[%s1183_s29 + $0x40] sm:$0xff]   ;;  %948 = vmatprep.mubr.msk.bf16.mxu0 %vm274_vm0, %v1027_v2  ;;  %v1030_v5 = vld [vmem:[%s1183_s29 + $0x48] sm:$0xff]   ;;  %v1032_v7 = vld [vmem:[%s1183_s29 + $0x50] sm:$0xff]  }
  0x1a   : > { %964 = vmatprep.mubr.msk.bf16.mxu1 %vm274_vm0, %v1028_v3  ;;  %949 = vmatmul.mubr.msk.bf16.vlgmr.msra.gmra.mrb[0].mxu0 %vm274_vm0, %v1029_v4  ;;  %v1033_v8 = vld [vmem:[%s1183_s29 + $0x18] sm:$0xff]   ;;  %v1035_v10 = vld [vmem:[%s1183_s29 + $0x20] sm:$0xff]   ;;  %v1037_v12 = vld [vmem:[%s1183_s29 + $0x28] sm:$0xff]   ;;  %p1053_p3 = pnand %p1052_p2, %p1046_p13 }
  0x1b   : > { %965 = vmatmul.mubr.msk.bf16.vlgmr.msra.gmra.mrb[0].mxu1 %vm274_vm0, %v1030_v5  ;;  %952 = vmatprep.mubr.msk.bf16.mxu0 %vm274_vm0, %v1031_v6  ;;  %v1034_v9 = vld [vmem:[%s1183_s29 + $0x58] sm:$0xff]   ;;  %v1036_v11 = vld [vmem:[%s1183_s29 + $0x60] sm:$0xff]   ;;  %v1038_v13 = vld [vmem:[%s1183_s29 + $0x68] sm:$0xff]  }
  0x1c   : > { %968 = vmatprep.mubr.msk.bf16.mxu1 %vm274_vm0, %v1032_v7  ;;  %v1039_v14 = vld [vmem:[%s1183_s29 + $0x30] sm:$0xff]   ;;  %v1041_v16 = vld [vmem:[%s1183_s29 + $0x38] sm:$0xff]  }
  0x1d   : > { %v1040_v15 = vld [vmem:[%s1183_s29 + $0x70] sm:$0xff]   ;;  %v1042_v17 = vld [vmem:[%s1183_s29 + $0x78] sm:$0xff]  }
  0x22   : > { %953 = vmatmul.mubr.msk.bf16.gmra.mrb[4].mxu0 %vm274_vm0, %v1033_v8 }
  0x23   : > { %969 = vmatmul.mubr.msk.bf16.gmra.mrb[4].mxu1 %vm274_vm0, %v1034_v9  ;;  %956 = vmatprep.mubr.msk.bf16.mxu0 %vm274_vm0, %v1035_v10 }
  0x24   : > { %972 = vmatprep.mubr.msk.bf16.mxu1 %vm274_vm0, %v1036_v11 }
  0x2a   : > { %957 = vmatmul.mubr.msk.bf16.gmra.mrb[8].mxu0 %vm274_vm0, %v1037_v12 }
  0x2b   : > { %973 = vmatmul.mubr.msk.bf16.gmra.mrb[8].mxu1 %vm274_vm0, %v1038_v13  ;;  %960 = vmatprep.mubr.msk.bf16.mxu0 %vm274_vm0, %v1039_v14 }
  0x2c   : > { %976 = vmatprep.mubr.msk.bf16.mxu1 %vm274_vm0, %v1040_v15 }
  0x32   : > { %961 = vmatmul.mubr.msk.bf16.gmra.mrb[12].mxu0 %vm274_vm0, %v1041_v16 }
  0x33   : > { %977 = vmatmul.mubr.msk.bf16.gmra.mrb[12].mxu1 %vm274_vm0, %v1042_v17 }
  0xed   : > { %v950_v18 = vpop.f32.mrb[0].mxu0 }
  0xee   : > { %v966_v19 = vpop.f32.mrb[0].mxu1  ;;  %v357_v20 = vpop.f32.mrb[1].mxu0 }
  0xef   : > { %v421_v21 = vpop.f32.mrb[1].mxu1  ;;  %v951_v22 = vpop.f32.mrb[2].mxu0 }
  0xf0   : > { %v839_v23 = vpack.c.bf16 %v951_v22, %v950_v18  ;;  %v967_v24 = vpop.f32.mrb[2].mxu1  ;;  %v360_v25 = vpop.f32.mrb[3].mxu0 }
  0xf1   : > { %v879_v26 = vpack.c.bf16 %v967_v24, %v966_v19  ;;  %v834_v27 = vpack.c.bf16 %v360_v25, %v357_v20  ;;  %v424_v28 = vpop.f32.mrb[3].mxu1 }
  0xf2   : > { %911 = vst [vmem:[%s1220_s4 + $0x8] sm:$0xff] %v839_v23   ;;  %v874_v29 = vpack.c.bf16 %v424_v28, %v421_v21 }
  0xf3   : > { %919 = vst [vmem:[%s1220_s4 + $0x48] sm:$0xff] %v879_v26   ;;  %835 = vst [vmem:[%s1220_s4] sm:$0xff] %v834_v27  }
  0xf4   : > { %918 = vst [vmem:[%s1220_s4 + $0x40] sm:$0xff] %v874_v29  }
  0xf5   : > { %v954_v30 = vpop.f32.mrb[4].mxu0 }
  0xf6   : > { %v970_v31 = vpop.f32.mrb[4].mxu1  ;;  %v373_v32 = vpop.f32.mrb[5].mxu0 }
  0xf7   : > { %v437_v33 = vpop.f32.mrb[5].mxu1  ;;  %v955_v34 = vpop.f32.mrb[6].mxu0 }
  0xf8   : > { %v849_v35 = vpack.c.bf16 %v955_v34, %v954_v30  ;;  %v971_v36 = vpop.f32.mrb[6].mxu1  ;;  %v376_v37 = vpop.f32.mrb[7].mxu0 }
  0xf9   : > { %v889_v38 = vpack.c.bf16 %v971_v36, %v970_v31  ;;  %v844_v39 = vpack.c.bf16 %v376_v37, %v373_v32  ;;  %v440_v40 = vpop.f32.mrb[7].mxu1 }
  0xfa   : > { %913 = vst [vmem:[%s1220_s4 + $0x18] sm:$0xff] %v849_v35   ;;  %v884_v41 = vpack.c.bf16 %v440_v40, %v437_v33 }
  0xfb   : > { %921 = vst [vmem:[%s1220_s4 + $0x58] sm:$0xff] %v889_v38   ;;  %912 = vst [vmem:[%s1220_s4 + $0x10] sm:$0xff] %v844_v39  }
  0xfc   : > { %920 = vst [vmem:[%s1220_s4 + $0x50] sm:$0xff] %v884_v41  }
  0xfd   : > { %v958_v42 = vpop.f32.mrb[8].mxu0 }
  0xfe   : > { %v974_v43 = vpop.f32.mrb[8].mxu1  ;;  %v389_v44 = vpop.f32.mrb[9].mxu0 }
  0xff   : > { %v453_v45 = vpop.f32.mrb[9].mxu1  ;;  %v959_v46 = vpop.f32.mrb[10].mxu0 }
 0x100   : > { %v859_v47 = vpack.c.bf16 %v959_v46, %v958_v42  ;;  %v975_v48 = vpop.f32.mrb[10].mxu1  ;;  %v392_v49 = vpop.f32.mrb[11].mxu0 }
 0x101   : > { %v899_v50 = vpack.c.bf16 %v975_v48, %v974_v43  ;;  %v854_v51 = vpack.c.bf16 %v392_v49, %v389_v44  ;;  %v456_v52 = vpop.f32.mrb[11].mxu1 }
 0x102   : > { %915 = vst [vmem:[%s1220_s4 + $0x28] sm:$0xff] %v859_v47   ;;  %v894_v53 = vpack.c.bf16 %v456_v52, %v453_v45 }
 0x103   : > { %923 = vst [vmem:[%s1220_s4 + $0x68] sm:$0xff] %v899_v50   ;;  %914 = vst [vmem:[%s1220_s4 + $0x20] sm:$0xff] %v854_v51  }
 0x104   : > { %922 = vst [vmem:[%s1220_s4 + $0x60] sm:$0xff] %v894_v53  }
 0x105   : > { %v962_v54 = vpop.f32.mrb[12].mxu0 }
 0x106   : > { %v978_v55 = vpop.f32.mrb[12].mxu1  ;;  %v405_v56 = vpop.f32.mrb[13].mxu0 }
 0x107   : > { %v469_v57 = vpop.f32.mrb[13].mxu1  ;;  %v963_v58 = vpop.f32.mrb[14].mxu0 }
 0x108   : > { %v869_v59 = vpack.c.bf16 %v963_v58, %v962_v54  ;;  %v979_v60 = vpop.f32.mrb[14].mxu1  ;;  %v408_v61 = vpop.f32.mrb[15].mxu0 }
 0x109   : > { %v909_v62 = vpack.c.bf16 %v979_v60, %v978_v55  ;;  %v864_v63 = vpack.c.bf16 %v408_v61, %v405_v56  ;;  %v472_v0 = vpop.f32.mrb[15].mxu1 }
 0x10a   : > { %917 = vst [vmem:[%s1220_s4 + $0x38] sm:$0xff] %v869_v59   ;;  %v904_v1 = vpack.c.bf16 %v472_v0, %v469_v57 }
 0x10b   : > { %925 = vst [vmem:[%s1220_s4 + $0x78] sm:$0xff] %v909_v62   ;;  %916 = vst [vmem:[%s1220_s4 + $0x30] sm:$0xff] %v864_v63  }
 0x10c   : > { %924 = vst [vmem:[%s1220_s4 + $0x70] sm:$0xff] %v904_v1  }
 0x10d   : > { %1056 = shalt.err (!%p1053_p3)
}
 0x10e   : > { %s1057_s23 = scalar_lea.hbm %s1239_s14, 2048  ;;  %s1061_s26 = scalar_lea.hbm %s1292_s2, 4096 }
 0x10f   : > { %p1058_p4 = scmp.ne.s32.totalorder %s1239_s14, %s1057_s23  ;;  %p1062_p9 = scmp.lt.u32.totalorder %s1239_s14, %s1292_s2 }
 0x110   : > { %p1063_p10 = scmp.lt.u32.totalorder %s1061_s26, %s1057_s23  ;;  %p1065_p12 = scmp.lt.u32.totalorder %s1057_s23, %s1239_s14 }
 0x111   : > { %p1059_p7 = pnand %p1058_p4, %p1163_p5 }
 0x112   : > { %p1064_p11 = por %p1063_p10, %p1062_p9 }
 0x113   : > { %p1060_p8 = pneg %p1059_p7 }
 0x114   : > { %p1066_p13 = por %p1065_p12, %p1064_p11 }
 0x116   : > { %p1067_p0 = pnand %p1066_p13, %p1060_p8 }
 0x118   : > { %1070 = shalt.err (!%p1067_p0)
}
 0x119   : > { %s1108_s29 = smov 64   ;;  %s1109_s30 = smov 4  }
 0x11a   : > { %984 = dma.vmem_to_hbm [thread:$0]  (%p1163_p5), %s1241_s6, 2048, %s1239_s14, %s1249_s13, %s1108_s29, %s1108_s29, %s1109_s30  }
 0x11b PF: > { %p990_p1 = scmp.ge.s32.totalorder %s1105_s12, 2  ;;  %s673_s3 = sand.u32 1, %s1093_s9  }
 0x11c   : > { %s674_s4 = scalar_lea.sflag [#allocation3], %s673_s3 }
 0x11d   : > { %p987_p2 = pnand %p990_p1, %p1167_p6 }
 0x11f   : > { %1088 = dma.done.wait (!%p987_p2), %s674_s4, 2048  }
 0x120   : > { %1090 = vsyncadd (!%p987_p2), %s674_s4, 4294965248  ;;  %p12_p3 = scmp.ge.s32.totalorder %s1150_s15, 4   ;;  %s1295_s9 = smov %s1097_s10 }
 0x121   : > { %s1296_s10 = smov %s1101_s11  ;;  %s1297_s11 = smov %s1161_s18 }
 0x122   : > { %s1298_s12 = smov %s1150_s15  ;;  %14 = sbr.rel (!%p12_p3) target bundleno = 3 (0x3), region = 63 }
 0x129   :  { %679 = vsyncpa [#allocation3], 1 }
 0x12a   :  { %681 = vsyncpa [#allocation3 + $0x1], 1 }

</bundles_post_ra>
